<compile_context>
chip_gen: v5e
topology: v5e:2x2
jax: 0.10.0
libtpu: 0.0.40
codegen_flags: <defaults>
</compile_context>

<pallas_src>
import functools

import jax
import jax.numpy as jnp
from jax.experimental import pallas as pl
from jax.experimental.pallas import tpu as pltpu


def _round_up(x: int, m: int) -> int:
    return (x + m - 1) // m * m


def _actor_kernel(obs_ref, w_ref, vec_ref, out_ref, *,
                  obs_dim: int, hidden_dim: int, batch: int, eps_row: int,
                  max_action: float, std: float, noise_limit: float,
                  ln_eps: float):
    H = hidden_dim
    x = obs_ref[...]                                           # [B, obs_dim]

    # Static, sublane-aligned views into the packed slabs.
    w1 = w_ref[0:obs_dim, 0:H]                                 # [obs_dim, H]
    w2 = w_ref[obs_dim:obs_dim + H, 0:H]                       # [H, H]
    w3 = w_ref[obs_dim + H:obs_dim + 2 * H, :]                 # [H, 128] (cols >= A are 0)
    b1    = vec_ref[0:1, 0:H]                                  # [1, H]
    gamma = vec_ref[1:2, 0:H]
    beta  = vec_ref[2:3, 0:H]
    b2    = vec_ref[3:4, 0:H]
    b3    = vec_ref[4:5, :]                                    # [1, 128]
    eps   = vec_ref[eps_row:eps_row + batch, :]                # [B, 128]

    # ---- Linear(obs_dim -> hidden) ----
    h = jnp.dot(x, w1, preferred_element_type=jnp.float32) + b1

    # ---- LayerNorm(hidden): single-pass statistics ----
    s  = jnp.sum(h, axis=-1, keepdims=True)
    s2 = jnp.sum(h * h, axis=-1, keepdims=True)
    mu = s * (1.0 / H)
    var = s2 * (1.0 / H) - mu * mu
    h = (h - mu) * jax.lax.rsqrt(var + ln_eps)
    h = h * gamma + beta

    # ---- ReLU ----
    h = jnp.maximum(h, 0.0)

    # ---- Linear(hidden -> hidden) + ReLU ----
    h = jnp.maximum(jnp.dot(h, w2, preferred_element_type=jnp.float32) + b2, 0.0)

    # ---- Linear(hidden -> action, lane-padded to 128) + Tanh, scale ----
    a = jnp.dot(h, w3, preferred_element_type=jnp.float32) + b3     # [B, 128]
    mu_act = jnp.tanh(a) * max_action

    # ---- noise = clip(std * eps, +-noise_limit); padded lanes stay 0 ----
    noise = jnp.clip(std * eps, -noise_limit, noise_limit)

    out_ref[...] = jnp.clip(mu_act + noise, -max_action, max_action)


@functools.partial(jax.jit, static_argnames=("max_action", "std_scale", "ln_eps"))
def simple_actor_forward(obs, params, eps, *, max_action: float = 1.0,
                         std_scale: float = 0.1, ln_eps: float = 1e-5):
    """Pallas forward pass of SimpleActor.

    obs:    [B, obs_dim] float32
    params: dict with w1 [obs,H], b1 [H], gamma [H], beta [H],
                      w2 [H,H], b2 [H], w3 [H,A], b3 [A]
            (weights stored [in, out], i.e. transposed vs. PyTorch nn.Linear)
    eps:    [B, A] standard-normal draws (zeros => deterministic / mean path)
    """
    B, obs_dim = obs.shape
    H = params["w1"].shape[1]
    A = params["w3"].shape[1]
    lanes = max(128, _round_up(H, 128), _round_up(A, 128))
    std = float(std_scale) * float(max_action)
    noise_limit = 3.0 * std

    # --- pack the three weight matrices into one lane-aligned slab (constant
    #     across calls; under jit this is folded / reused) ---
    w_rows = _round_up(obs_dim + 2 * H, 8)
    wslab = jnp.zeros((w_rows, lanes), jnp.float32)
    wslab = wslab.at[0:obs_dim, 0:H].set(params["w1"])
    wslab = wslab.at[obs_dim:obs_dim + H, 0:H].set(params["w2"])
    wslab = wslab.at[obs_dim + H:obs_dim + 2 * H, 0:A].set(params["w3"])

    # --- pack 1-D params (rows 0..4) and noise draws (rows 8..8+B-1) ---
    eps_row = 8
    v_rows = _round_up(eps_row + B, 8)
    vslab = jnp.zeros((v_rows, lanes), jnp.float32)
    vslab = vslab.at[0, 0:H].set(params["b1"])
    vslab = vslab.at[1, 0:H].set(params["gamma"])
    vslab = vslab.at[2, 0:H].set(params["beta"])
    vslab = vslab.at[3, 0:H].set(params["b2"])
    vslab = vslab.at[4, 0:A].set(params["b3"])
    vslab = vslab.at[eps_row:eps_row + B, 0:A].set(eps)

    kernel = functools.partial(
        _actor_kernel,
        obs_dim=obs_dim, hidden_dim=H, batch=B, eps_row=eps_row,
        max_action=float(max_action), std=std, noise_limit=noise_limit,
        ln_eps=float(ln_eps))

    vmem = pl.BlockSpec(memory_space=pltpu.MemorySpace.VMEM)
    out = pl.pallas_call(
        kernel,
        out_shape=jax.ShapeDtypeStruct((B, lanes), jnp.float32),
        in_specs=[vmem, vmem, vmem],
        out_specs=vmem,
    )(obs, wslab, vslab)
    return out[:, :A]


def init_params(key, obs_dim, hidden_dim, action_dim):
    """Mirrors SimpleActor._init_weights: kaiming_uniform_(relu) weights,
    zero biases, LayerNorm gamma=1 beta=0."""
    def kaiming_uniform(k, fan_in, shape):
        bound = (6.0 / fan_in) ** 0.5       # gain sqrt(2) * sqrt(3/fan_in)
        return jax.random.uniform(k, shape, jnp.float32, -bound, bound)

    k1, k2, k3 = jax.random.split(key, 3)
    return {
        "w1": kaiming_uniform(k1, obs_dim, (obs_dim, hidden_dim)),
        "b1": jnp.zeros((hidden_dim,), jnp.float32),
        "gamma": jnp.ones((hidden_dim,), jnp.float32),
        "beta": jnp.zeros((hidden_dim,), jnp.float32),
        "w2": kaiming_uniform(k2, hidden_dim, (hidden_dim, hidden_dim)),
        "b2": jnp.zeros((hidden_dim,), jnp.float32),
        "w3": kaiming_uniform(k3, hidden_dim, (hidden_dim, action_dim)),
        "b3": jnp.zeros((action_dim,), jnp.float32),
    }


def _reference_forward(obs, params, eps, max_action, std_scale, ln_eps=1e-5):
    std = std_scale * max_action
    noise_limit = 3.0 * std
    h = obs @ params["w1"] + params["b1"]
    mu = h.mean(-1, keepdims=True)
    var = ((h - mu) ** 2).mean(-1, keepdims=True)
    h = (h - mu) / jnp.sqrt(var + ln_eps) * params["gamma"] + params["beta"]
    h = jnp.maximum(h, 0.0)
    h = jnp.maximum(h @ params["w2"] + params["b2"], 0.0)
    mu_act = jnp.tanh(h @ params["w3"] + params["b3"]) * max_action
    noise = jnp.clip(std * eps, -noise_limit, noise_limit)
    return jnp.clip(mu_act + noise, -max_action, max_action)


if __name__ == "__main__":
    B, OBS, HID, ACT = 8, 16, 32, 8
    MAX_ACTION, STD_SCALE = 1.0, 0.1

    key = jax.random.PRNGKey(0)
    k_obs, k_par, k_noise = jax.random.split(key, 3)

    obs = jax.random.normal(k_obs, (B, OBS), jnp.float32)
    params = init_params(k_par, OBS, HID, ACT)

    # mean=True / no-noise path
    eps_zero = jnp.zeros((B, ACT), jnp.float32)
    out_mean = simple_actor_forward(obs, params, eps_zero,
                                    max_action=MAX_ACTION, std_scale=STD_SCALE)
    jax.block_until_ready(out_mean)

    # use_noise path (eps generated host-side; scale/clamp inside kernel)
    eps = jax.random.normal(k_noise, (B, ACT), jnp.float32)
    out_noisy = simple_actor_forward(obs, params, eps,
                                     max_action=MAX_ACTION, std_scale=STD_SCALE)
    jax.block_until_ready(out_noisy)

    # Correctness vs. pure-JAX reference.
    ref_mean = _reference_forward(obs, params, eps_zero, MAX_ACTION, STD_SCALE)
    ref_noisy = _reference_forward(obs, params, eps, MAX_ACTION, STD_SCALE)
    assert out_mean.shape == (B, ACT) and out_noisy.shape == (B, ACT)
    assert jnp.allclose(out_mean, ref_mean, atol=1e-4), "mean path mismatch"
    assert jnp.allclose(out_noisy, ref_noisy, atol=1e-4), "noisy path mismatch"

    print("KERNEL_OK")
</pallas_src>

<mosaic_0001>
module attributes {stable_mosaic.version = 11 : i64} {
  func.func @_actor_kernel(%arg0: memref<8x16xf32, #tpu.memory_space<vmem>>, %arg1: memref<80x128xf32, #tpu.memory_space<vmem>>, %arg2: memref<16x128xf32, #tpu.memory_space<vmem>>, %arg3: memref<8x128xf32, #tpu.memory_space<vmem>>) attributes {dimension_semantics = [], scalar_prefetch = 0 : i64, scratch_operands = 0 : i64, tpu.core_type = #tpu.core_type<tc>} {
    %c0 = arith.constant 0 : index
    %c0_0 = arith.constant 0 : index
    %0 = vector.load %arg0[%c0, %c0_0] : memref<8x16xf32, #tpu.memory_space<vmem>>, vector<8x16xf32>
    %c0_1 = arith.constant 0 : index
    %c0_2 = arith.constant 0 : index
    %1 = vector.load %arg1[%c0_1, %c0_2] : memref<80x128xf32, #tpu.memory_space<vmem>>, vector<16x32xf32>
    %c16 = arith.constant 16 : index
    %c0_3 = arith.constant 0 : index
    %2 = vector.load %arg1[%c16, %c0_3] : memref<80x128xf32, #tpu.memory_space<vmem>>, vector<32x32xf32>
    %c48 = arith.constant 48 : index
    %c0_4 = arith.constant 0 : index
    %3 = vector.load %arg1[%c48, %c0_4] : memref<80x128xf32, #tpu.memory_space<vmem>>, vector<32x128xf32>
    %c0_5 = arith.constant 0 : index
    %c0_6 = arith.constant 0 : index
    %4 = vector.load %arg2[%c0_5, %c0_6] : memref<16x128xf32, #tpu.memory_space<vmem>>, vector<1x32xf32>
    %c1 = arith.constant 1 : index
    %c0_7 = arith.constant 0 : index
    %5 = vector.load %arg2[%c1, %c0_7] : memref<16x128xf32, #tpu.memory_space<vmem>>, vector<1x32xf32>
    %c2 = arith.constant 2 : index
    %c0_8 = arith.constant 0 : index
    %6 = vector.load %arg2[%c2, %c0_8] : memref<16x128xf32, #tpu.memory_space<vmem>>, vector<1x32xf32>
    %c3 = arith.constant 3 : index
    %c0_9 = arith.constant 0 : index
    %7 = vector.load %arg2[%c3, %c0_9] : memref<16x128xf32, #tpu.memory_space<vmem>>, vector<1x32xf32>
    %c4 = arith.constant 4 : index
    %c0_10 = arith.constant 0 : index
    %8 = vector.load %arg2[%c4, %c0_10] : memref<16x128xf32, #tpu.memory_space<vmem>>, vector<1x128xf32>
    %c8 = arith.constant 8 : index
    %c0_11 = arith.constant 0 : index
    %9 = vector.load %arg2[%c8, %c0_11] : memref<16x128xf32, #tpu.memory_space<vmem>>, vector<8x128xf32>
    %cst = arith.constant dense<0.000000e+00> : vector<8x32xf32>
    %10 = tpu.matmul %0, %1, %cst {dimension_numbers = #tpu.dot_dimension_numbers<[1], [0], [0], [1], [0, 0, 1, 1], [], []>} : vector<8x16xf32>, vector<16x32xf32>, vector<8x32xf32> -> vector<8x32xf32>
    %11 = vector.broadcast %4 : vector<1x32xf32> to vector<8x32xf32>
    %12 = arith.addf %10, %11 : vector<8x32xf32>
    %cst_12 = arith.constant dense<0.000000e+00> : vector<8xf32>
    %13 = vector.multi_reduction <add>, %12, %cst_12 [1] : vector<8x32xf32> to vector<8xf32>
    %14 = vector.shape_cast %13 : vector<8xf32> to vector<8x1xf32>
    %15 = arith.mulf %12, %12 : vector<8x32xf32>
    %cst_13 = arith.constant dense<0.000000e+00> : vector<8xf32>
    %16 = vector.multi_reduction <add>, %15, %cst_13 [1] : vector<8x32xf32> to vector<8xf32>
    %17 = vector.shape_cast %16 : vector<8xf32> to vector<8x1xf32>
    %cst_14 = arith.constant 3.125000e-02 : f32
    %18 = vector.broadcast %cst_14 : f32 to vector<8x1xf32>
    %19 = arith.mulf %14, %18 : vector<8x1xf32>
    %cst_15 = arith.constant 3.125000e-02 : f32
    %20 = vector.broadcast %cst_15 : f32 to vector<8x1xf32>
    %21 = arith.mulf %17, %20 : vector<8x1xf32>
    %22 = arith.mulf %19, %19 : vector<8x1xf32>
    %23 = arith.subf %21, %22 : vector<8x1xf32>
    %24 = vector.broadcast %19 : vector<8x1xf32> to vector<8x32xf32>
    %25 = arith.subf %12, %24 : vector<8x32xf32>
    %cst_16 = arith.constant 9.99999974E-6 : f32
    %26 = vector.broadcast %cst_16 : f32 to vector<8x1xf32>
    %27 = arith.addf %23, %26 : vector<8x1xf32>
    %28 = math.rsqrt %27 : vector<8x1xf32>
    %29 = vector.broadcast %28 : vector<8x1xf32> to vector<8x32xf32>
    %30 = arith.mulf %25, %29 : vector<8x32xf32>
    %31 = vector.broadcast %5 : vector<1x32xf32> to vector<8x32xf32>
    %32 = arith.mulf %30, %31 : vector<8x32xf32>
    %33 = vector.broadcast %6 : vector<1x32xf32> to vector<8x32xf32>
    %34 = arith.addf %32, %33 : vector<8x32xf32>
    %cst_17 = arith.constant 0.000000e+00 : f32
    %35 = vector.broadcast %cst_17 : f32 to vector<8x32xf32>
    %36 = arith.maximumf %34, %35 : vector<8x32xf32>
    %cst_18 = arith.constant dense<0.000000e+00> : vector<8x32xf32>
    %37 = tpu.matmul %36, %2, %cst_18 {dimension_numbers = #tpu.dot_dimension_numbers<[1], [0], [0], [1], [0, 0, 1, 1], [], []>} : vector<8x32xf32>, vector<32x32xf32>, vector<8x32xf32> -> vector<8x32xf32>
    %38 = vector.broadcast %7 : vector<1x32xf32> to vector<8x32xf32>
    %39 = arith.addf %37, %38 : vector<8x32xf32>
    %cst_19 = arith.constant 0.000000e+00 : f32
    %40 = vector.broadcast %cst_19 : f32 to vector<8x32xf32>
    %41 = arith.maximumf %39, %40 : vector<8x32xf32>
    %cst_20 = arith.constant dense<0.000000e+00> : vector<8x128xf32>
    %42 = tpu.matmul %41, %3, %cst_20 {dimension_numbers = #tpu.dot_dimension_numbers<[1], [0], [0], [1], [0, 0, 1, 1], [], []>} : vector<8x32xf32>, vector<32x128xf32>, vector<8x128xf32> -> vector<8x128xf32>
    %43 = vector.broadcast %8 : vector<1x128xf32> to vector<8x128xf32>
    %44 = arith.addf %42, %43 : vector<8x128xf32>
    %45 = math.tanh %44 : vector<8x128xf32>
    %cst_21 = arith.constant 1.000000e+00 : f32
    %46 = vector.broadcast %cst_21 : f32 to vector<8x128xf32>
    %47 = arith.mulf %45, %46 : vector<8x128xf32>
    %cst_22 = arith.constant 1.000000e-01 : f32
    %48 = vector.broadcast %cst_22 : f32 to vector<8x128xf32>
    %49 = arith.mulf %48, %9 : vector<8x128xf32>
    %cst_23 = arith.constant -3.000000e-01 : f32
    %cst_24 = arith.constant 3.000000e-01 : f32
    %50 = vector.broadcast %cst_23 : f32 to vector<8x128xf32>
    %51 = arith.maximumf %50, %49 : vector<8x128xf32>
    %52 = vector.broadcast %cst_24 : f32 to vector<8x128xf32>
    %53 = arith.minimumf %52, %51 : vector<8x128xf32>
    %54 = arith.addf %47, %53 : vector<8x128xf32>
    %cst_25 = arith.constant -1.000000e+00 : f32
    %cst_26 = arith.constant 1.000000e+00 : f32
    %55 = vector.broadcast %cst_25 : f32 to vector<8x128xf32>
    %56 = arith.maximumf %55, %54 : vector<8x128xf32>
    %57 = vector.broadcast %cst_26 : f32 to vector<8x128xf32>
    %58 = arith.minimumf %57, %56 : vector<8x128xf32>
    %c0_27 = arith.constant 0 : index
    %c0_28 = arith.constant 0 : index
    %59 = vector.load %arg3[%c0_27, %c0_28] : memref<8x128xf32, #tpu.memory_space<vmem>>, vector<8x128xf32>
    tpu.vector_store %arg3[%c0_27, %c0_28], %58 {strides = array<i32>} : memref<8x128xf32, #tpu.memory_space<vmem>>, vector<8x128xf32>,
    return
  }
}

</mosaic_0001>

<bundles_post_ra>
// kernel: simple_actor_forward.1
= control target key start
LH: loop header
LB: loop body
LE: loop exit
PB: predicated region body
PF: predicated region fallthrough
CT: control target
= control target key end

     0   :  { %vm33_vm0 = vcmask 130048   ;;  %s280_s0 = inlined_call_operand.vmem [shape: f32[8,16], index: 0, kind: input, shape index: {}]   ;;  %s281_s1 = inlined_call_operand.vmem [shape: f32[80,128], index: 1, kind: input, shape index: {}]   ;;  %s282_s2 = inlined_call_operand.vmem [shape: f32[16,128], index: 2, kind: input, shape index: {}]   ;;  %s283_s3 = inlined_call_operand.hbm [shape: f32[8,128], index: 3, kind: output, shape index: {}]  }
   0x1   :  { %v17_v0 = vld [vmem:[%s281_s1 + $0x8] sm:$0xff]  ;;  %v16_v1 = vld [vmem:[%s281_s1] sm:$0xff] }
   0x2   :  { %51 = vmatpush.msra.mxu0 %v17_v0  ;;  %v15_v2 = vld [vmem:[%s280_s0] sm:$0xff] }
   0x4   :  { %52 = vmatpush.msra.mxu0 %v16_v1 }
   0x5   :  { %8 = vsyncpa [#allocation3], 0  ;;  %160 = vmatmul.msk.f32.vlgmr.msra.gmra.mxu0 %vm33_vm0, %v15_v2  ;;  %v166_v3 = vld [vmem:[%s282_s2] ss:$0 sm:$0xff]  ;;  %vm57_vm1 = vcmask 261120   ;;  %v21_v9 = vld [vmem:[%s281_s1 + $0x28] sm:$0xff] }
   0x6   :  { %v20_v10 = vld [vmem:[%s281_s1 + $0x20] sm:$0xff]  ;;  %103 = vmatpush.msra.mxu1 %v21_v9  ;;  %v19_v12 = vld [vmem:[%s281_s1 + $0x18] sm:$0xff]  ;;  %v18_v13 = vld [vmem:[%s281_s1 + $0x10] sm:$0xff]  ;;  %s151_s0 = sshll.u32 %s283_s3, 4  ;;  %s152_s0 = int_to_ptr.hbm [resolvable:$true] %s151_s0 }
   0x7   :  { %v25_v18 = vld [vmem:[%s281_s1 + $0x48] sm:$0xff]  ;;  %v167_v28 = vld [vmem:[%s282_s2 + $0x1] ss:$0 sm:$0xff]  ;;  %v168_v31 = vld [vmem:[%s282_s2 + $0x2] ss:$0 sm:$0xff] }
   0x8   :  { %104 = vmatpush.msra.mxu1 %v20_v10  ;;  %128 = vmatpush.msra.mxu2 %v25_v18  ;;  %v24_v35 = vld [vmem:[%s281_s1 + $0x40] sm:$0xff]  ;;  %v23_v36 = vld [vmem:[%s281_s1 + $0x38] sm:$0xff]  ;;  %v22_v37 = vld [vmem:[%s281_s1 + $0x30] sm:$0xff]  ;;  %s201_s1 = smov [#allocation2]  }
   0x9   :  { %v169_v38 = vld [vmem:[%s282_s2 + $0x3] ss:$0 sm:$0xff]  ;;  %v170_v42 = vld [vmem:[%s282_s2 + $0x4] ss:$0 sm:$0xff]  ;;  %v31_v43 = vld [vmem:[%s282_s2 + $0x8] sm:$0xff]  ;;  %s149_s18 = sshll.u32 %s201_s1, 4  ;;  %s150_s18 = int_to_ptr.vmem [resolvable:$true] %s149_s18 }
   0xa   :  { %105 = vmatpush.msra.mxu1 %v19_v12  ;;  %129 = vmatpush.msra.mxu2 %v24_v35  ;;  %v137_v46 = vmul.f32 0.1, %v31_v43 }
   0xc   :  { %106 = vmatpush.msra.mxu1 %v18_v13  ;;  %130 = vmatpush.msra.mxu2 %v23_v36  ;;  %v163_v47 = vclamps-f32 %v137_v46, 0.3 }
   0xe   :  { %131 = vmatpush.msra.mxu2 %v22_v37 }
  0x82   :  { %v54_v4 = vpop.f32.mrf.mxu0 }
  0x83   :  { %v55_v5 = vadd.f32 %v166_v3, %v54_v4 }
  0x85   :  { %v58_v6 = vsel %vm57_vm1, %v55_v5, 0.0  ;;  %v61_v7 = vmul.f32 %v55_v5, %v55_v5 }
  0x86   :  { %59 = vadd.xlane.f32.xlu0 %v58_v6 }
  0x87   :  { %v62_v8 = vsel %vm57_vm1, %v61_v7, 0.0 }
  0x8e   :  { %63 = vadd.xlane.f32.xlu0 %v62_v8 }
  0xf9   :  { %v60_v11 = vpop.xlane.xlu0 %59 }
  0xfa   :  { %v65_v14 = vmul.f32 0.03125, %v60_v11 }
  0xfc   :  { %v67_v16 = vmul.f32 %v65_v14, %v65_v14  ;;  %v69_v27 = vsub.f32 %v55_v5, %v65_v14 }
 0x101   :  { %v64_v15 = vpop.xlane.xlu0 %63 }
 0x102   :  { %v66_v17 = vmul.f32 0.03125, %v64_v15 }
 0x104   :  { %v68_v19 = vsub.f32 %v66_v17, %v67_v16 }
 0x106   :  { %v70_v20 = vadd.f32 1e-05, %v68_v19 }
 0x108   :  { %171 = vrsqrt.f32 %v70_v20  ;;  %vm77_vm3 = vweird.f32 %v70_v20 }
 0x10e   :  { %v172_v21 = vpop.eup %171 }
 0x10f   :  { %v72_v22 = vmul.f32 %v172_v21, %v70_v20  ;;  %vm78_vm2 = vweird.f32 %v172_v21 }
 0x110   :  { %vm79_vm4 = vmor %vm77_vm3, %vm78_vm2 }
 0x111   :  { %v73_v23 = vmul.f32 %v172_v21, %v72_v22 }
 0x113   :  { %v74_v24 = vmul.f32 0.5, %v73_v23 }
 0x115   :  { %v75_v25 = vsub.f32 1.5, %v74_v24 }
 0x117   :  { %v76_v26 = vmul.f32 %v172_v21, %v75_v25 }
 0x119   :  { %v80_v29 = vsel %vm79_vm4, %v172_v21, %v76_v26 }
 0x11a   :  { %v81_v30 = vmul.f32 %v80_v29, %v69_v27 }
 0x11c   :  { %v83_v32 = vmul.f32 %v167_v28, %v81_v30 }
 0x11e   :  { %v85_v33 = vadd.f32 %v168_v31, %v83_v32 }
 0x120   :  { %v86_v34 = vmax.f32 %v85_v33, 0.0 }
 0x122   :  { %161 = vmatmul.msk.f32.vlgmr.msra.gmra.mxu1 %vm57_vm1, %v86_v34 }
 0x19f   :  { %v108_v39 = vpop.f32.mrf.mxu1 }
 0x1a0   :  { %v109_v40 = vadd.f32 %v169_v38, %v108_v39 }
 0x1a2   :  { %v111_v41 = vmax.f32 %v109_v40, 0.0 }
 0x1a4   :  { %162 = vmatmul.msk.f32.vlgmr.msra.gmra.mxu2 %vm57_vm1, %v111_v41 }
 0x227   :  { %v133_v44 = vpop.f32.mrf.mxu2 }
 0x228   :  { %v134_v45 = vadd.f32 %v170_v42, %v133_v44 }
 0x22a   :  { %173 = vtanh.f32 %v134_v45 }
 0x230   :  { %v174_v48 = vpop.eup %173 }
 0x231   :  { %v140_v49 = vadd.f32 %v174_v48, %v163_v47 }
 0x233   :  { %v164_v50 = vclamps-f32 %v140_v49, 1.0 }
 0x235   :  { %143 = vst [vmem:[#allocation2] sm:$0xff] %v164_v50 }
 0x236   :  { %154 = dma.vmem_to_hbm [thread:$0]  %s150_s18, 128, %s152_s0, [#allocation3]  }
 0x237   :  { %199 = dma.done.wait [#allocation3], 128  }
 0x238   :  { %200 = vsyncadd [#allocation3], 4294967168 }
 0x239   :  { %159 = vsyncpa [#allocation3], 1 }

</bundles_post_ra>
